<compile_context>
chip_gen: v5e
topology: v5e:2x2
jax: 0.10.0
libtpu: 0.0.40
codegen_flags: <defaults>
</compile_context>

<pallas_src>
import jax
import jax.numpy as jnp
from jax.experimental import pallas as pl
from jax.experimental.pallas import tpu as pltpu


def _rup8(x):
    return -(-x // 8) * 8


def make_base_learner_forward(config, spt_size, len_user, len_item):
    l1_u = tuple(tuple(t) for t in config["l1_u"])
    l1_i = tuple(tuple(t) for t in config["l1_i"])
    nu, ni = len(l1_u), len(l1_i)

    Du = sum(out for _, _, out in l1_u)
    Di = sum(out for _, _, out in l1_i)
    H, k2 = config["l2"]
    assert k2 == Du + Di, "l2 input dim must equal total projected features"
    assert tuple(config["l3"]) == (1, H), "final layer must map hidden -> 1"

    # Lane width of the parameter slab (H <= 128 here -> 128).
    LANE = max(128, ((H + 127) // 128) * 128)

    # Row offsets inside the slab; every section starts on an 8-row boundary
    # so all in-kernel sublane offsets are aligned.
    off_weu = 0                                  # W_eff_u : (len_user, H)
    off_wei = off_weu + _rup8(len_user)          # W_eff_i : (len_item, H)
    off_b2 = off_wei + _rup8(len_item)           # b2 row  : (1, H)
    off_w3 = off_b2 + 8                          # w3 row  : (1, H)
    off_b3 = off_w3 + 8                          # b3      : (1, 1)
    R = off_b3 + 8

    def kernel(xu_ref, xi_ref, p_ref, out_ref):
        # Per-task views (batch axis squeezed by the BlockSpecs).
        xu = xu_ref[...]                                   # (1, Lu)
        xi = xi_ref[...]                                   # (S, Li)

        # Static, 8-aligned, lane-offset-0 slices of the parameter slab.
        weu = p_ref[off_weu:off_weu + len_user, 0:H]       # (Lu, H)
        wei = p_ref[off_wei:off_wei + len_item, 0:H]       # (Li, H)
        b2 = p_ref[off_b2:off_b2 + 1, 0:H]                 # (1, H)
        w3 = p_ref[off_w3:off_w3 + 1, 0:H]                 # (1, H)
        b3 = p_ref[off_b3:off_b3 + 1, 0:1]                 # (1, 1)

        # User branch folded into a (1, H) bias: xu @ (W_u @ w2t[:Du]) + b2.
        u_bias = jnp.dot(xu, weu, preferred_element_type=jnp.float32) + b2

        # Item branch: single fused matmul xi @ (W_i @ w2t[Du:]), then sigmoid.
        h = jax.nn.sigmoid(
            jnp.dot(xi, wei, preferred_element_type=jnp.float32) + u_bias)

        # Final N=1 layer on the VPU/XLU (multiply + lane reduce), not the MXU.
        o = jnp.sum(h * w3, axis=-1, keepdims=True) + b3   # (S, 1)
        out_ref[...] = jax.nn.sigmoid(o)

    _call_cache = {}

    def _get_call(batch):
        if batch not in _call_cache:
            _call_cache[batch] = pl.pallas_call(
                kernel,
                grid=(batch,),
                in_specs=[
                    pl.BlockSpec((None, 1, len_user), lambda b: (b, 0, 0)),
                    pl.BlockSpec((None, spt_size, len_item), lambda b: (b, 0, 0)),
                    pl.BlockSpec((None, R, LANE), lambda b: (b, 0, 0)),
                ],
                out_specs=pl.BlockSpec((None, spt_size, 1), lambda b: (b, 0, 0)),
                out_shape=jax.ShapeDtypeStruct((batch, spt_size, 1), jnp.float32),
                compiler_params=pltpu.CompilerParams(
                    dimension_semantics=("parallel",)),
            )
        return _call_cache[batch]

    def pack_params(vars_list):
        """Fold l1 into l2 and pack everything into one (R, LANE) f32 slab.

        Hoist this out of the MAML hot path: call once per parameter set.
        Exact because the reference has no activation between l1 and l2.
        """
        u_ws = vars_list[:nu]
        i_ws = vars_list[nu:nu + ni]
        w2, b2, w3, b3 = vars_list[nu + ni:nu + ni + 4]

        w2t = jnp.asarray(w2, jnp.float32).T               # (Du + Di, H)

        weu = jnp.zeros((len_user, H), jnp.float32)
        col = 0
        for (op, ed, out), w in zip(l1_u, u_ws):
            weu = weu.at[op:ed, :].add(
                jnp.asarray(w, jnp.float32) @ w2t[col:col + out, :])
            col += out
        wei = jnp.zeros((len_item, H), jnp.float32)
        for (op, ed, out), w in zip(l1_i, i_ws):
            wei = wei.at[op:ed, :].add(
                jnp.asarray(w, jnp.float32) @ w2t[col:col + out, :])
            col += out

        P = jnp.zeros((R, LANE), jnp.float32)
        P = P.at[off_weu:off_weu + len_user, 0:H].set(weu)
        P = P.at[off_wei:off_wei + len_item, 0:H].set(wei)
        P = P.at[off_b2, 0:H].set(jnp.asarray(b2, jnp.float32).reshape(H))
        P = P.at[off_w3, 0:H].set(jnp.asarray(w3, jnp.float32).reshape(H))
        P = P.at[off_b3, 0].set(jnp.asarray(b3, jnp.float32).reshape(()))
        return P

    def forward_batch(xu_b, xi_b, packed_b):
        """xu_b: (B, 1, Lu) or (B, Lu); xi_b: (B, S, Li); packed_b: (B, R, LANE)."""
        xu_b = jnp.asarray(xu_b, jnp.float32).reshape(-1, 1, len_user)
        xi_b = jnp.asarray(xi_b, jnp.float32).reshape(-1, spt_size, len_item)
        packed_b = jnp.asarray(packed_b, jnp.float32).reshape(-1, R, LANE)
        batch = xi_b.shape[0]
        return _get_call(batch)(xu_b, xi_b, packed_b)

    def forward(xu, xi, packed):
        """Single-task convenience wrapper (B=1). Returns (spt_size, 1)."""
        out = forward_batch(
            jnp.asarray(xu, jnp.float32).reshape(1, 1, len_user),
            jnp.asarray(xi, jnp.float32).reshape(1, spt_size, len_item),
            packed.reshape(1, R, LANE))
        return out[0]

    return pack_params, forward, forward_batch


def reference_forward(config, xu, xi, vars_list):
    """Pure-JAX replica of BaseLearner.forward for correctness checking."""
    idx = 0
    to_u, to_i = [], []
    for op, ed, _out in config["l1_u"]:
        to_u.append(xu[op:ed] @ vars_list[idx]); idx += 1
    for op, ed, _out in config["l1_i"]:
        to_i.append(xi[:, op:ed] @ vars_list[idx]); idx += 1
    xu_p = jnp.concatenate(to_u, 0)
    xi_p = jnp.concatenate(to_i, 1)
    x = jnp.concatenate(
        [jnp.tile(xu_p[None, :], (xi_p.shape[0], 1)), xi_p], axis=1)
    w, b = vars_list[idx], vars_list[idx + 1]; idx += 2
    x = jax.nn.sigmoid(x @ w.T + b)
    w, b = vars_list[idx], vars_list[idx + 1]
    return jax.nn.sigmoid(x @ w.T + b)


if __name__ == "__main__":
    # Small, deterministic configuration (mirrors the torch __init__ shapes).
    config = {
        "l1_u": [(0, 8, 4), (8, 16, 4)],     # user vec len 16 -> 4 + 4 = 8 feats
        "l1_i": [(0, 12, 8), (12, 24, 8)],   # item vec len 24 -> 8 + 8 = 16 feats
        "l2": (32, 24),                      # (hidden, 8 + 16)
        "l3": (1, 32),
    }
    spt_size = 8
    len_user = 16
    len_item = 24
    n_tasks = 4                              # batched MAML tasks -> one pallas_call

    def init_vars(k):
        ks = iter(jax.random.split(k, 16))
        vs = []
        for op, ed, out in config["l1_u"]:
            vs.append(jax.random.normal(next(ks), (ed - op, out), jnp.float32))
        for op, ed, out in config["l1_i"]:
            vs.append(jax.random.normal(next(ks), (ed - op, out), jnp.float32))
        vs.append(jax.random.normal(next(ks), config["l2"], jnp.float32))
        vs.append(jax.random.normal(next(ks), (config["l2"][0],), jnp.float32))
        vs.append(jax.random.normal(next(ks), config["l3"], jnp.float32))
        vs.append(jax.random.normal(next(ks), (config["l3"][0],), jnp.float32))
        return vs

    key = jax.random.PRNGKey(0)
    all_keys = jax.random.split(key, n_tasks * 3)

    pack_params, forward, forward_batch = make_base_learner_forward(
        config, spt_size, len_user, len_item)

    xu_list, xi_list, vars_tasks, packed_list = [], [], [], []
    for t in range(n_tasks):
        vs = init_vars(all_keys[3 * t])
        xu = jax.random.normal(all_keys[3 * t + 1], (len_user,), jnp.float32)
        xi = jax.random.normal(all_keys[3 * t + 2], (spt_size, len_item),
                               jnp.float32)
        vars_tasks.append(vs)
        xu_list.append(xu)
        xi_list.append(xi)
        packed_list.append(pack_params(vs))     # hoisted out of the hot path

    xu_b = jnp.stack(xu_list)[:, None, :]        # (B, 1, Lu)
    xi_b = jnp.stack(xi_list)                    # (B, S, Li)
    packed_b = jnp.stack(packed_list)            # (B, R, 128)

    # Batched forward: one pallas_call, grid=(B,), batch axis "parallel".
    out_b = jax.block_until_ready(forward_batch(xu_b, xi_b, packed_b))
    assert out_b.shape == (n_tasks, spt_size, 1)

    ok = True
    for t in range(n_tasks):
        ref = reference_forward(config, xu_list[t], xi_list[t], vars_tasks[t])
        ok &= bool(jnp.allclose(out_b[t], ref, atol=3e-5, rtol=1e-4))

    # Single-task path.
    out0 = jax.block_until_ready(forward(xu_list[0], xi_list[0], packed_list[0]))
    ref0 = reference_forward(config, xu_list[0], xi_list[0], vars_tasks[0])
    assert out0.shape == (spt_size, 1)
    ok &= bool(jnp.allclose(out0, ref0, atol=3e-5, rtol=1e-4))

    assert ok, "kernel output does not match the pure-JAX reference"
    print("KERNEL_OK")
</pallas_src>

<mosaic_0001>
module attributes {stable_mosaic.version = 11 : i64} {
  func.func @kernel(%arg0: i32, %arg1: memref<1x1x16xf32, #tpu.memory_space<vmem>>, %arg2: memref<1x8x24xf32, #tpu.memory_space<vmem>>, %arg3: memref<1x64x128xf32, #tpu.memory_space<vmem>>, %arg4: memref<1x8x1xf32, #tpu.memory_space<vmem>>) attributes {dimension_semantics = [#tpu.dimension_semantics<parallel>], iteration_bounds = array<i64: 4>, scalar_prefetch = 0 : i64, scratch_operands = 0 : i64, tpu.core_type = #tpu.core_type<tc>, window_params = [{transform_indices = @transform_0, window_bounds = array<i64: 1, 1, 16>}, {transform_indices = @transform_1, window_bounds = array<i64: 1, 8, 24>}, {transform_indices = @transform_2, window_bounds = array<i64: 1, 64, 128>}, {transform_indices = @transform_3, window_bounds = array<i64: 1, 8, 1>}]} {
    %c0 = arith.constant 0 : index
    %c0_0 = arith.constant 0 : index
    %c0_1 = arith.constant 0 : index
    %0 = vector.load %arg1[%c0, %c0_0, %c0_1] : memref<1x1x16xf32, #tpu.memory_space<vmem>>, vector<1x1x16xf32>
    %1 = vector.shape_cast %0 : vector<1x1x16xf32> to vector<1x16xf32>
    %c0_2 = arith.constant 0 : index
    %c0_3 = arith.constant 0 : index
    %c0_4 = arith.constant 0 : index
    %2 = vector.load %arg2[%c0_2, %c0_3, %c0_4] : memref<1x8x24xf32, #tpu.memory_space<vmem>>, vector<1x8x24xf32>
    %3 = vector.shape_cast %2 : vector<1x8x24xf32> to vector<8x24xf32>
    %c0_5 = arith.constant 0 : index
    %c0_6 = arith.constant 0 : index
    %c0_7 = arith.constant 0 : index
    %4 = vector.load %arg3[%c0_5, %c0_6, %c0_7] : memref<1x64x128xf32, #tpu.memory_space<vmem>>, vector<1x16x32xf32>
    %5 = vector.shape_cast %4 : vector<1x16x32xf32> to vector<16x32xf32>
    %c0_8 = arith.constant 0 : index
    %c16 = arith.constant 16 : index
    %c0_9 = arith.constant 0 : index
    %6 = vector.load %arg3[%c0_8, %c16, %c0_9] : memref<1x64x128xf32, #tpu.memory_space<vmem>>, vector<1x24x32xf32>
    %7 = vector.shape_cast %6 : vector<1x24x32xf32> to vector<24x32xf32>
    %c0_10 = arith.constant 0 : index
    %c40 = arith.constant 40 : index
    %c0_11 = arith.constant 0 : index
    %8 = vector.load %arg3[%c0_10, %c40, %c0_11] : memref<1x64x128xf32, #tpu.memory_space<vmem>>, vector<1x1x32xf32>
    %9 = vector.shape_cast %8 : vector<1x1x32xf32> to vector<1x32xf32>
    %c0_12 = arith.constant 0 : index
    %c48 = arith.constant 48 : index
    %c0_13 = arith.constant 0 : index
    %10 = vector.load %arg3[%c0_12, %c48, %c0_13] : memref<1x64x128xf32, #tpu.memory_space<vmem>>, vector<1x1x32xf32>
    %11 = vector.shape_cast %10 : vector<1x1x32xf32> to vector<1x32xf32>
    %c0_14 = arith.constant 0 : index
    %c56 = arith.constant 56 : index
    %c0_15 = arith.constant 0 : index
    %12 = vector.load %arg3[%c0_14, %c56, %c0_15] : memref<1x64x128xf32, #tpu.memory_space<vmem>>, vector<1x1x1xf32>
    %13 = vector.shape_cast %12 : vector<1x1x1xf32> to vector<1x1xf32>
    %cst = arith.constant dense<0.000000e+00> : vector<1x32xf32>
    %14 = tpu.matmul %1, %5, %cst {dimension_numbers = #tpu.dot_dimension_numbers<[1], [0], [0], [1], [0, 0, 1, 1], [], []>} : vector<1x16xf32>, vector<16x32xf32>, vector<1x32xf32> -> vector<1x32xf32>
    %15 = arith.addf %14, %9 : vector<1x32xf32>
    %cst_16 = arith.constant dense<0.000000e+00> : vector<8x32xf32>
    %16 = tpu.matmul %3, %7, %cst_16 {dimension_numbers = #tpu.dot_dimension_numbers<[1], [0], [0], [1], [0, 0, 1, 1], [], []>} : vector<8x24xf32>, vector<24x32xf32>, vector<8x32xf32> -> vector<8x32xf32>
    %17 = vector.broadcast %15 : vector<1x32xf32> to vector<8x32xf32>
    %18 = arith.addf %16, %17 : vector<8x32xf32>
    %19 = arith.negf %18 : vector<8x32xf32>
    %20 = math.exp %19 : vector<8x32xf32>
    %cst_17 = arith.constant 1.000000e+00 : f32
    %21 = vector.broadcast %cst_17 : f32 to vector<8x32xf32>
    %22 = arith.addf %21, %20 : vector<8x32xf32>
    %23 = arith.divf %21, %22 : vector<8x32xf32>
    %24 = vector.broadcast %11 : vector<1x32xf32> to vector<8x32xf32>
    %25 = arith.mulf %23, %24 : vector<8x32xf32>
    %cst_18 = arith.constant dense<0.000000e+00> : vector<8xf32>
    %26 = vector.multi_reduction <add>, %25, %cst_18 [1] : vector<8x32xf32> to vector<8xf32>
    %27 = vector.shape_cast %26 : vector<8xf32> to vector<8x1xf32>
    %28 = vector.broadcast %13 : vector<1x1xf32> to vector<8x1xf32>
    %29 = arith.addf %27, %28 : vector<8x1xf32>
    %30 = arith.negf %29 : vector<8x1xf32>
    %31 = math.exp %30 : vector<8x1xf32>
    %cst_19 = arith.constant 1.000000e+00 : f32
    %32 = vector.broadcast %cst_19 : f32 to vector<8x1xf32>
    %33 = arith.addf %32, %31 : vector<8x1xf32>
    %34 = arith.divf %32, %33 : vector<8x1xf32>
    %c0_20 = arith.constant 0 : index
    %c0_21 = arith.constant 0 : index
    %c0_22 = arith.constant 0 : index
    %35 = vector.load %arg4[%c0_20, %c0_21, %c0_22] : memref<1x8x1xf32, #tpu.memory_space<vmem>>, vector<1x8x1xf32>
    %36 = vector.shape_cast %35 : vector<1x8x1xf32> to vector<8x1xf32>
    %37 = vector.shape_cast %34 : vector<8x1xf32> to vector<1x8x1xf32>
    tpu.vector_store %arg4[%c0_20, %c0_21, %c0_22], %37 {strides = array<i32>} : memref<1x8x1xf32, #tpu.memory_space<vmem>>, vector<1x8x1xf32>,
    return
  }
  func.func @transform_0(%arg0: i32) -> (i32, i32, i32) {
    %c0_i32 = arith.constant 0 : i32
    %c0_i32_0 = arith.constant 0 : i32
    %c0_i32_1 = arith.constant 0 : i32
    return %arg0, %c0_i32, %c0_i32_0 : i32, i32, i32
  }
  func.func @transform_1(%arg0: i32) -> (i32, i32, i32) {
    %c0_i32 = arith.constant 0 : i32
    %c0_i32_0 = arith.constant 0 : i32
    %c0_i32_1 = arith.constant 0 : i32
    return %arg0, %c0_i32, %c0_i32_0 : i32, i32, i32
  }
  func.func @transform_2(%arg0: i32) -> (i32, i32, i32) {
    %c0_i32 = arith.constant 0 : i32
    %c0_i32_0 = arith.constant 0 : i32
    %c0_i32_1 = arith.constant 0 : i32
    return %arg0, %c0_i32, %c0_i32_0 : i32, i32, i32
  }
  func.func @transform_3(%arg0: i32) -> (i32, i32, i32) {
    %c0_i32 = arith.constant 0 : i32
    %c0_i32_0 = arith.constant 0 : i32
    %c0_i32_1 = arith.constant 0 : i32
    return %arg0, %c0_i32, %c0_i32_0 : i32, i32, i32
  }
}

</mosaic_0001>

<bundles_post_ra>
// kernel: tpu_custom_call.1
= control target key start
LH: loop header
LB: loop body
LE: loop exit
PB: predicated region body
PF: predicated region fallthrough
CT: control target
= control target key end

     0   :  { %8 = vsyncpa [#allocation3], 0  ;;  %s858_s0 = inlined_call_operand.hbm [shape: f32[4,1,16], index: 0, kind: input, shape index: {}]   ;;  %s859_s1 = inlined_call_operand.hbm [shape: f32[4,8,24], index: 1, kind: input, shape index: {}]   ;;  %s860_s2 = inlined_call_operand.hbm [shape: f32[4,64,128], index: 2, kind: input, shape index: {}]   ;;  %s861_s3 = inlined_call_operand.vmem [shape: f32[4,8,1], index: 3, kind: output, shape index: {}]  }
   0x1   :  { %10 = vsyncpa [#allocation3 + $0x1], 0 }
   0x2   :  { %11 = vsyncpa [#allocation5], 0 }
   0x3   :  { %13 = vsyncpa [#allocation5 + $0x1], 0  ;;  %s705_s12 = smov 0   ;;  %s707_s13 = smov 0  }
   0x4   :  { %s709_s14 = smov 0   ;;  %s711_s15 = smov 0  }
   0x5 LB: > { %s724_s16 = sadd.s32 4294967295, %s681_s15   ;;  %s727_s17 = sadd.s32 1, %s681_s15   ;;  %s681_s15 = sphi %s711_s15, %s868_s15   ;;  %s677_s14 = sphi %s709_s14, %s867_s14   ;;  %s673_s13 = sphi %s707_s13, %s866_s13   ;;  %s669_s12 = sphi %s705_s12, %s865_s12  }
   0x6   : > { %s23_s18 = ssub.s32 %s681_s15, %s727_s17  ;;  %s26_s19 = sadd.s32 1, %s677_s14 }
   0x7   : > { %p24_p0 = scmp.eq.s32.totalorder %s23_s18, 0  ;;  %p33_p1 = scmp.ne.s32.totalorder %s677_s14, %s673_s13 }
   0x8   : > { %p34_p2 = scmp.eq.s32.totalorder %s681_s15, 0  ;;  %p39_p3 = scmp.ne.s32.totalorder %s673_s13, %s669_s12 }
   0x9   : > { %s737_s20 = scalar_select %p24_p0, %s677_s14, %s26_s19  }
   0xa   : > { %p35_p4 = por %p34_p2, %p33_p1  ;;  %p40_p5 = scmp.eq.s32.totalorder %s724_s16, 0 }
   0xb   : > { %p508_p6 = scmp.lt.s32.totalorder %s681_s15, 4  ;;  %s746_s22 = sand.u32 1, %s677_s14  }
   0xc   : > { %p741_p7 = por %p40_p5, %p39_p3  ;;  %s158_s24 = sand.u32 1, %s681_s15  }
   0xd   : > { %p748_p8 = pnand %p508_p6, %p35_p4  ;;  %s476_s25 = sshll.u32 %s746_s22, 3 }
   0xe   : > { %s477_s26 = sshll.u32 %s681_s15, 3  ;;  %s162_s27 = scalar_lea.vmem [#allocation4], %s476_s25 }
   0xf   : > { %s170_s28 = sshll.u32 %s162_s27, 4  ;;  %s166_s4 = scalar_lea.hbm %s859_s1, %s477_s26  ;;  %s171_s28 = int_to_ptr.vmem [resolvable:$true] %s170_s28 }
  0x10   : > { %s168_s5 = sshll.u32 %s166_s4, 4  ;;  %s478_s6 = sshll.u32 %s746_s22, 6  ;;  %s169_s5 = int_to_ptr.hbm [resolvable:$true] %s168_s5 }
  0x11   : > { %p481_p9 = scmp.ge.s32.totalorder %s681_s15, 1  ;;  %s760_s7 = scalar_lea.sflag [#allocation5], %s158_s24 }
  0x12   : > { %s553_s8 = sshra.s32 %s169_s5, 4  ;;  %p557_p11 = pneg %p748_p8  ;;  %s554_s8 = int_to_ptr.hbm [resolvable:$true] %s553_s8 }
  0x13   : > { %s555_s9 = scalar_lea.hbm %s554_s8, 8  ;;  %s560_s12 = scalar_lea.hbm %s859_s1, 32 }
  0x14   : > { %p556_p10 = scmp.ne.s32.totalorder %s554_s8, %s555_s9  ;;  %p561_p0 = scmp.lt.s32.totalorder %s554_s8, %s859_s1 }
  0x15   : > { %p562_p1 = scmp.lt.s32.totalorder %s560_s12, %s555_s9 }
  0x16   : > { %p558_p12 = pnand %p557_p11, %p556_p10 }
  0x17   : > { %p563_p2 = por %p562_p1, %p561_p0 }
  0x18   : > { %p559_p13 = pneg %p558_p12 }
  0x1a   : > { %p564_p3 = pnand %p563_p2, %p559_p13 }
  0x1c   : > { %567 = shalt.err (!%p564_p3)
}
  0x1d   : > { %504 = dma.hbm_to_vmem [thread:$0]  (!%p748_p8), %s169_s5, 128, %s171_s28, %s760_s7  }
  0x1e   : > { %p197_p4 = scmp.lt.s32.totalorder %s681_s15, 5  ;;  %s147_s26 = scalar_lea.hbm %s858_s0, %s681_s15 }
  0x1f   : > { %s149_s29 = sshll.u32 %s147_s26, 4  ;;  %s144_s30 = scalar_lea.vmem [#allocation2], %s746_s22  ;;  %s150_s29 = int_to_ptr.hbm [resolvable:$true] %s149_s29 }
  0x20   : > { %p783_p5 = pnand %p481_p9, %p197_p4  ;;  %s151_s4 = sshll.u32 %s144_s30, 4  ;;  %s152_s4 = int_to_ptr.vmem [resolvable:$true] %s151_s4 }
  0x21   : > { %s142_s8 = scalar_lea.sflag [#allocation3], %s746_s22  ;;  %s583_s9 = sshra.s32 %s150_s29, 4  ;;  %s584_s9 = int_to_ptr.hbm [resolvable:$true] %s583_s9 }
  0x22   : > { %s585_s10 = scalar_lea.hbm %s584_s9, 1  ;;  %s590_s11 = scalar_lea.hbm %s858_s0, 4 }
  0x23   : > { %p586_p6 = scmp.ne.s32.totalorder %s584_s9, %s585_s10  ;;  %p591_p9 = scmp.lt.s32.totalorder %s584_s9, %s858_s0 }
  0x24   : > { %p592_p13 = scmp.lt.s32.totalorder %s590_s11, %s585_s10 }
  0x25   : > { %p588_p10 = pnand %p586_p6, %p557_p11 }
  0x26   : > { %p593_p0 = por %p592_p13, %p591_p9 }
  0x27   : > { %p589_p12 = pneg %p588_p10 }
  0x29   : > { %p594_p1 = pnand %p593_p0, %p589_p12 }
  0x2b   : > { %597 = shalt.err (!%p594_p1)
}
  0x2c   : > { %501 = dma.hbm_to_vmem [thread:$0]  (!%p748_p8), %s150_s29, 16, %s152_s4, %s142_s8  }
  0x2d   : > { %s491_s19 = sshll.u32 %s681_s15, 6  ;;  %s181_s24 = scalar_lea.vmem [#allocation6], %s478_s6 }
  0x2e   : > { %s189_s25 = sshll.u32 %s181_s24, 4  ;;  %s186_s28 = scalar_lea.hbm %s860_s2, %s491_s19  ;;  %s190_s25 = int_to_ptr.vmem [resolvable:$true] %s189_s25 }
  0x2f   : > { %s187_s9 = sshll.u32 %s186_s28, 4  ;;  %s620_s22 = scalar_lea.hbm %s860_s2, 256  ;;  %s188_s9 = int_to_ptr.hbm [resolvable:$true] %s187_s9 }
  0x30   : > { %s613_s10 = sshra.s32 %s188_s9, 4  ;;  %s614_s10 = int_to_ptr.hbm [resolvable:$true] %s613_s10 }
  0x31   : > { %s615_s5 = scalar_lea.hbm %s614_s10, 64  ;;  %p621_p6 = scmp.lt.s32.totalorder %s614_s10, %s860_s2 }
  0x32   : > { %p616_p2 = scmp.ne.s32.totalorder %s614_s10, %s615_s5  ;;  %p622_p10 = scmp.lt.s32.totalorder %s620_s22, %s615_s5 }
  0x34   : > { %p618_p3 = pnand %p616_p2, %p557_p11  ;;  %p623_p12 = por %p622_p10, %p621_p6 }
  0x36   : > { %p619_p4 = pneg %p618_p3 }
  0x38   : > { %p624_p9 = pnand %p623_p12, %p619_p4 }
  0x3a   : > { %627 = shalt.err (!%p624_p9)
}
  0x3b   : > { %s683_s8 = smov 128   ;;  %s684_s11 = smov 8  }
  0x3c   : > { %507 = dma.hbm_to_vmem [thread:$0]  (!%p748_p8), %s188_s9, 1024, %s190_s25, %s760_s7, %s683_s8, %s683_s8, %s684_s11  }
  0x3d   : > { %201 = sbr.rel (%p783_p5) target bundleno = 386 (0x182), region = 32  ;;  %s203_s12 = sand.u32 (!%p783_p5), 1, %s673_s13  }
  0x3e   : > { %s204_s18 = scalar_lea.sflag (!%p783_p5), [#allocation3], %s203_s12  ;;  %s206_s19 = scalar_lea.vmem (!%p783_p5), [#allocation2], %s203_s12 }
  0x42   : > { %660 = dma.done.wait (%p741_p7), %s204_s18, 16  }
  0x43   : > { %662 = vsyncadd (%p741_p7), %s204_s18, 4294967280  ;;  %s212_s24 = sand.u32 1, %s724_s16   ;;  %s482_s26 = sshll.u32 %s203_s12, 3 }
  0x44   : > { %s213_s30 = scalar_lea.sflag [#allocation5], %s212_s24  ;;  %s216_s23 = scalar_lea.vmem [#allocation4], %s482_s26 }
  0x45   : > { %664 = dma.done.wait (%p741_p7), %s213_s30, 1152  }
  0x46   : > { %666 = vsyncadd (%p741_p7), %s213_s30, 4294966144  ;;  %s483_s7 = sshll.u32 %s203_s12, 6  ;;  %v262_v3 = vld [vmem:[%s206_s19] sm:$0x1]  ;;  %vm272_vm0 = vcmask 130048   ;;  %v263_v6 = vld [vmem:[%s216_s23] sm:$0xff] }
  0x47   : > { %s830_s27 = scalar_lea.vmem [#allocation6], %s483_s7  ;;  %vm297_vm1 = vcmask 195584   ;;  %vm342_vm6 = vcmask 261120   ;;  %p258_p7 = scmp.lt.s32.totalorder %s724_s16, 3  ;;  %vm367_vm10 = vcmask 7168  }
  0x48   : > { %v265_v0 = vld [vmem:[%s830_s27 + $0x8] sm:$0xff]  ;;  %v264_v1 = vld [vmem:[%s830_s27] sm:$0xff]  ;;  %v267_v4 = vld [vmem:[%s830_s27 + $0x18] sm:$0xff] }
  0x49   : > { %v268_v2 = vld [vmem:[%s830_s27 + $0x20] sm:$0xff]  ;;  %290 = vmatpush.msra.mxu0 %v265_v0  ;;  %v266_v5 = vld [vmem:[%s830_s27 + $0x10] sm:$0xff]  ;;  %v269_v7 = vld [vmem:[%s830_s27 + $0x28] sm:$0x1]  ;;  %s870_s16 = smov (!%p258_p7, %s724_s16), 3 }
  0x4a   : > { %314 = vmatpush.msra.mxu1 %v268_v2  ;;  %v543_v23 = vld [vmem:[%s830_s27 + $0x30] ss:$0 sm:$0xff]  ;;  %v544_v29 = vld [vmem:[%s830_s27 + $0x38] ss:$0 sm:$0xff]  ;;  %s484_s21 = sshll.u32 %s870_s16, 3 }
  0x4b   : > { %291 = vmatpush.msra.mxu0 %v264_v1  ;;  %s261_s9 = scalar_lea.vmem %s861_s3, %s484_s21 }
  0x4c   : > { %315 = vmatpush.msra.mxu1 %v267_v4  ;;  %485 = vmatmul.msk.f32.vlgmr.msra.gmra.mxu0 %vm272_vm0, %v262_v3 }
  0x4e   : > { %316 = vmatpush.msra.mxu1 %v266_v5 }
  0x4f   : > { %486 = vmatmul.msk.f32.vlgmr.msra.gmra.mxu1 %vm297_vm1, %v263_v6 }
  0xc9   : > { %v293_v8 = vpop.f32.mrf.mxu0 }
  0xca   : > { %v294_v9 = vadd.f32 %v293_v8, %v269_v7 }
  0xcc   : > { %v318_v10 = vpop.f32.mrf.mxu1  ;;  %v296_v11 = vperm.slane %v294_v9, 0 }
  0xce   : > { %v319_v12 = vadd.f32 %v318_v10, %v296_v11 }
  0xd0   : > { %v487_v13 = vmul.f32 -1.442695, %v319_v12 }
  0xd2   : > { %545 = vpow2.f32 %v487_v13 }
  0xd8   : > { %v546_v14 = vpop.eup %545 }
  0xd9   : > { %v324_v15 = vadd.f32 1.0, %v546_v14 }
  0xdb   : > { %547 = vrcp.f32 %v324_v15  ;;  %v336_v19 = vand.u32 2147483648, %v324_v15  ;;  %v334_v21 = vand.u32 2147483647, %v324_v15  ;;  %vm330_vm3 = vweird.f32 %v324_v15 }
  0xdd   : > { %v337_v24 = vor.u32 1.1754944e-38, %v336_v19  ;;  %vm335_vm5 = vcmp.eq.f32.partialorder %v334_v21, 8.507059e+37 }
  0xe1   : > { %v548_v16 = vpop.eup %547 }
  0xe2   : > { %v326_v17 = vmul.f32 %v548_v16, %v324_v15  ;;  %vm331_vm2 = vweird.f32 %v548_v16 }
  0xe3   : > { %vm332_vm4 = vmor %vm330_vm3, %vm331_vm2 }
  0xe4   : > { %v327_v18 = vsub.f32 1.0, %v326_v17 }
  0xe6   : > { %v328_v20 = vmul.f32 %v548_v16, %v327_v18 }
  0xe8   : > { %v329_v22 = vadd.f32 %v548_v16, %v328_v20 }
  0xea   : > { %v333_v25 = vsel %vm332_vm4, %v548_v16, %v329_v22 }
  0xeb   : > { %v338_v26 = vsel %vm335_vm5, %v337_v24, %v333_v25 }
  0xec   : > { %v341_v27 = vmul.f32 %v543_v23, %v338_v26 }
  0xee   : > { %v343_v28 = vsel %vm342_vm6, %v341_v27, 0.0 }
  0xef   : > { %344 = vadd.xlane.f32.xlu0 %v343_v28 }
 0x162   : > { %v345_v30 = vpop.xlane.xlu0 %344 }
 0x163   : > { %v347_v31 = vadd.f32 %v544_v29, %v345_v30 }
 0x165   : > { %v488_v32 = vmul.f32 -1.442695, %v347_v31 }
 0x167   : > { %549 = vpow2.f32 %v488_v32 }
 0x16d   : > { %v550_v33 = vpop.eup %549 }
 0x16e   : > { %v351_v34 = vadd.f32 1.0, %v550_v33 }
 0x170   : > { %551 = vrcp.f32 %v351_v34  ;;  %v363_v38 = vand.u32 2147483648, %v351_v34  ;;  %v361_v40 = vand.u32 2147483647, %v351_v34  ;;  %vm357_vm8 = vweird.f32 %v351_v34 }
 0x172   : > { %v364_v42 = vor.u32 1.1754944e-38, %v363_v38  ;;  %vm362_vm11 = vcmp.eq.f32.partialorder %v361_v40, 8.507059e+37 }
 0x176   : > { %v552_v35 = vpop.eup %551 }
 0x177   : > { %v353_v36 = vmul.f32 %v552_v35, %v351_v34  ;;  %vm358_vm7 = vweird.f32 %v552_v35 }
 0x178   : > { %vm359_vm9 = vmor %vm357_vm8, %vm358_vm7 }
 0x179   : > { %v354_v37 = vsub.f32 1.0, %v353_v36 }
 0x17b   : > { %v355_v39 = vmul.f32 %v552_v35, %v354_v37 }
 0x17d   : > { %v356_v41 = vadd.f32 %v552_v35, %v355_v39 }
 0x17f   : > { %v360_v43 = vsel %vm359_vm9, %v552_v35, %v356_v41 }
 0x180   : > { %v365_v44 = vsel %vm362_vm11, %v364_v42, %v360_v43 }
 0x181   : > { %368 = vst.msk [vmem:[%s261_s9] sm:$0xff] %vm367_vm10, %v365_v44 }
 0x182 PF: > { %p16_p8 = scmp.ge.s32.totalorder %s727_s17, 6   ;;  %s865_s12 = smov %s673_s13 }
 0x183   : > { %s866_s13 = smov %s677_s14  ;;  %s867_s14 = smov %s737_s20 }
 0x184   : > { %s868_s15 = smov %s727_s17  ;;  %18 = sbr.rel (!%p16_p8) target bundleno = 5 (0x5), region = 96 }
 0x189   :  { %388 = vsyncpa [#allocation3], 1 }
 0x18a   :  { %390 = vsyncpa [#allocation3 + $0x1], 1 }
 0x18b   :  { %391 = vsyncpa [#allocation5], 1 }
 0x18c   :  { %393 = vsyncpa [#allocation5 + $0x1], 1 }

</bundles_post_ra>
